<compile_context>
chip_gen: v7x
topology: tpu7x:2x2x1
jax: 0.10.0
libtpu: 0.0.40
codegen_flags: <defaults>
</compile_context>

<pallas_src>
import functools

import jax
import jax.numpy as jnp
from jax.experimental import pallas as pl
from jax.experimental.pallas import tpu as pltpu


def _choose_heads_per_block(y_dim, k):
    """Pick heads-per-block: aim for ~128 output lanes per step (3*hpb*k),
    but keep >= 2 grid blocks when possible (v7x has 2 TensorCores)."""
    hpb = max(1, min(y_dim, 128 // max(1, 3 * k)))
    if y_dim >= 2:
        hpb = max(1, min(hpb, y_dim // 2))
    while y_dim % hpb:
        hpb -= 1
    return hpb


def _mog_kernel(x_ref, w_ref, b_ref, out_ref, *, A, heads, k):
    """One grid step = one block of `heads` heads.

    x_ref:   (Bpad, F)        f32
    w_ref:   (1, F, Npad)     f32  packed [pi heads | mean heads | var heads | 0-pad]
    b_ref:   (1, 1, Npad)     f32  same column layout
    out_ref: (1, Bpad, Npad)  f32  same column layout (lane-dense)
    """
    x = x_ref[...]                                    # (Bpad, F)
    w = w_ref[0]                                      # (F, Npad)
    b = b_ref[0]                                      # (1, Npad)

    # Single fused MXU matmul for pi/mean/var of every head in this block.
    z = jnp.dot(x, w, preferred_element_type=jnp.float32) + b   # (Bpad, Npad)

    G = heads * k
    pi_logits = z[:, :G]
    mean = z[:, G:2 * G]
    v = z[:, 2 * G:3 * G]

    # Per-head numerically stable softmax over the k mixture components.
    pieces = []
    for h in range(heads):                            # static, small unroll
        lg = pi_logits[:, h * k:(h + 1) * k]          # (Bpad, k)
        m = jnp.max(lg, axis=-1, keepdims=True)
        e = jnp.exp(lg - m)
        s = jnp.sum(e, axis=-1, keepdims=True)
        # approx=True -> EUP vrcp (free bundle slot in this kernel)
        pieces.append(e * pl.reciprocal(s, approx=True))
    pi = pieces[0] if heads == 1 else jnp.concatenate(pieces, axis=-1)

    # var heuristic: exp(.) when A == 0 else A * sigmoid(.)   (A is a Python
    # scalar, so the branch is resolved at trace time)
    var = jnp.exp(v) if A == 0 else A * jax.nn.sigmoid(v)

    n_pad = out_ref.shape[-1] - 3 * G
    parts = [pi, mean, var]
    if n_pad > 0:
        parts.append(jnp.zeros((x.shape[0], n_pad), jnp.float32))
    # One contiguous, lane-dense (Bpad, Npad) store.
    out_ref[0] = jnp.concatenate(parts, axis=-1)


def mog_out(x, w_pi, b_pi, w_mean, b_mean, w_var, b_var, A,
            *, heads_per_block=None):
    """Pallas implementation of MoGOut.forward.

    x:       (B, in_feat)            float32
    w_*:     (y_dim, in_feat, k)     float32   (transposed vs torch Linear)
    b_*:     (y_dim, 1, k)           float32
    returns: (y_dim, 3, B, k)        float32   (axis 1 = [pi, mean, var])
    """
    B, F = x.shape
    y_dim, _, k = w_pi.shape

    hpb = heads_per_block or _choose_heads_per_block(y_dim, k)
    nblk = y_dim // hpb
    G = hpb * k                                     # columns per segment
    Npad = ((3 * G + 127) // 128) * 128             # lane-dense (multiple of 128)
    Bpad = ((B + 7) // 8) * 8                       # sublane-aligned batch

    # --- pack weights: (nblk, F, Npad), columns = [pi heads | mean | var | pad]
    w = jnp.stack([w_pi, w_mean, w_var], axis=0)                 # (3, y_dim, F, k)
    w = w.reshape(3, nblk, hpb, F, k)
    w = jnp.transpose(w, (1, 3, 0, 2, 4)).reshape(nblk, F, 3 * G)
    w = jnp.pad(w, ((0, 0), (0, 0), (0, Npad - 3 * G)))

    # --- pack biases: (nblk, 1, Npad), same column layout
    b = jnp.stack([b_pi[:, 0], b_mean[:, 0], b_var[:, 0]], axis=0)  # (3, y_dim, k)
    b = b.reshape(3, nblk, hpb, k)
    b = jnp.transpose(b, (1, 0, 2, 3)).reshape(nblk, 1, 3 * G)
    b = jnp.pad(b, ((0, 0), (0, 0), (0, Npad - 3 * G)))

    # --- pad batch to a multiple of 8 (extra rows are dropped after the call)
    x_pad = jnp.pad(x, ((0, Bpad - B), (0, 0)))

    kernel = functools.partial(_mog_kernel, A=A, heads=hpb, k=k)

    out_packed = pl.pallas_call(
        kernel,
        out_shape=jax.ShapeDtypeStruct((nblk, Bpad, Npad), jnp.float32),
        grid_spec=pltpu.PrefetchScalarGridSpec(
            num_scalar_prefetch=0,
            grid=(nblk,),
            in_specs=[
                pl.BlockSpec((Bpad, F), lambda g: (0, 0)),       # x (resident)
                pl.BlockSpec((1, F, Npad), lambda g: (g, 0, 0)),  # packed W
                pl.BlockSpec((1, 1, Npad), lambda g: (g, 0, 0)),  # packed b
            ],
            out_specs=pl.BlockSpec((1, Bpad, Npad), lambda g: (g, 0, 0)),
        ),
        compiler_params=pltpu.CompilerParams(
            dimension_semantics=("parallel",)),
    )(x_pad, w, b)

    # --- unpack back to the PyTorch layout (y_dim, 3, B, k)
    out = out_packed[:, :B, :3 * G].reshape(nblk, B, 3, hpb, k)
    out = jnp.transpose(out, (0, 3, 2, 1, 4)).reshape(y_dim, 3, B, k)
    return out


def mog_out_ref(x, w_pi, b_pi, w_mean, b_mean, w_var, b_var, A):
    """Pure-JAX reference (mirrors the PyTorch forward)."""
    outs = []
    for d in range(w_pi.shape[0]):
        pi = jax.nn.softmax(x @ w_pi[d] + b_pi[d, 0], axis=-1)
        mean = x @ w_mean[d] + b_mean[d, 0]
        v = x @ w_var[d] + b_var[d, 0]
        var = jnp.exp(v) if A == 0 else A * jax.nn.sigmoid(v)
        outs.append(jnp.stack([pi, mean, var], axis=0))
    return jnp.stack(outs, axis=0)


if __name__ == "__main__":
    # Small, module-consistent shapes.
    B, in_feat, k, y_dim = 2, 32, 8, 4
    A = 2.0  # sigmoid branch; set A = 0 to exercise the exp branch

    key = jax.random.PRNGKey(0)
    ks = jax.random.split(key, 7)
    x = jax.random.normal(ks[0], (B, in_feat), dtype=jnp.float32)

    # Deterministic parameter init (per nn.Linear(in_feat, k), stored
    # transposed as (in_feat, k) so the kernel computes x @ W + b).
    scale = 1.0 / jnp.sqrt(jnp.float32(in_feat))
    w_pi = scale * jax.random.normal(ks[1], (y_dim, in_feat, k), jnp.float32)
    w_mean = scale * jax.random.normal(ks[2], (y_dim, in_feat, k), jnp.float32)
    w_var = scale * jax.random.normal(ks[3], (y_dim, in_feat, k), jnp.float32)
    b_pi = scale * jax.random.normal(ks[4], (y_dim, 1, k), jnp.float32)
    b_mean = scale * jax.random.normal(ks[5], (y_dim, 1, k), jnp.float32)
    b_var = scale * jax.random.normal(ks[6], (y_dim, 1, k), jnp.float32)

    out = mog_out(x, w_pi, b_pi, w_mean, b_mean, w_var, b_var, A)
    out = jax.block_until_ready(out)

    ref = mog_out_ref(x, w_pi, b_pi, w_mean, b_mean, w_var, b_var, A)
    assert out.shape == (y_dim, 3, B, k), out.shape
    # Tolerance loosened vs the pure-f32 version because the softmax
    # denominator uses the approximate EUP reciprocal (pl.reciprocal approx=True).
    assert jnp.allclose(out, ref, atol=2e-3, rtol=2e-3), "mismatch vs reference"

    print("KERNEL_OK")
</pallas_src>

<mosaic_0001>
module attributes {stable_mosaic.version = 11 : i64} {
  func.func @_mog_kernel(%arg0: i32, %arg1: memref<8x32xf32, #tpu.memory_space<vmem>>, %arg2: memref<1x32x128xf32, #tpu.memory_space<vmem>>, %arg3: memref<1x1x128xf32, #tpu.memory_space<vmem>>, %arg4: memref<1x8x128xf32, #tpu.memory_space<vmem>>) attributes {dimension_semantics = [#tpu.dimension_semantics<parallel>], iteration_bounds = array<i64: 2>, scalar_prefetch = 0 : i64, scratch_operands = 0 : i64, tpu.core_type = #tpu.core_type<tc>, window_params = [{pipeline_mode = #tpu.pipeline_mode<synchronous>, transform_indices = @transform_0, window_bounds = array<i64: 8, 32>}, {transform_indices = @transform_1, window_bounds = array<i64: 1, 32, 128>}, {transform_indices = @transform_2, window_bounds = array<i64: 1, 1, 128>}, {transform_indices = @transform_3, window_bounds = array<i64: 1, 8, 128>}]} {
    %c0 = arith.constant 0 : index
    %c0_0 = arith.constant 0 : index
    %0 = vector.load %arg1[%c0, %c0_0] : memref<8x32xf32, #tpu.memory_space<vmem>>, vector<8x32xf32>
    %c0_1 = arith.constant 0 : index
    %c0_2 = arith.constant 0 : index
    %c0_3 = arith.constant 0 : index
    %1 = vector.load %arg2[%c0_1, %c0_2, %c0_3] : memref<1x32x128xf32, #tpu.memory_space<vmem>>, vector<1x32x128xf32>
    %2 = vector.shape_cast %1 : vector<1x32x128xf32> to vector<32x128xf32>
    %c0_4 = arith.constant 0 : index
    %c0_5 = arith.constant 0 : index
    %c0_6 = arith.constant 0 : index
    %3 = vector.load %arg3[%c0_4, %c0_5, %c0_6] : memref<1x1x128xf32, #tpu.memory_space<vmem>>, vector<1x1x128xf32>
    %4 = vector.shape_cast %3 : vector<1x1x128xf32> to vector<1x128xf32>
    %cst = arith.constant dense<0.000000e+00> : vector<8x128xf32>
    %5 = tpu.matmul %0, %2, %cst {dimension_numbers = #tpu.dot_dimension_numbers<[1], [0], [0], [1], [0, 0, 1, 1], [], []>} : vector<8x32xf32>, vector<32x128xf32>, vector<8x128xf32> -> vector<8x128xf32>
    %6 = vector.broadcast %4 : vector<1x128xf32> to vector<8x128xf32>
    %7 = arith.addf %5, %6 : vector<8x128xf32>
    %8 = vector.extract_strided_slice %7 {offsets = [0, 0], sizes = [8, 16], strides = [1, 1]} : vector<8x128xf32> to vector<8x16xf32>
    %9 = vector.extract_strided_slice %7 {offsets = [0, 16], sizes = [8, 16], strides = [1, 1]} : vector<8x128xf32> to vector<8x16xf32>
    %10 = vector.extract_strided_slice %7 {offsets = [0, 32], sizes = [8, 16], strides = [1, 1]} : vector<8x128xf32> to vector<8x16xf32>
    %11 = vector.extract_strided_slice %8 {offsets = [0, 0], sizes = [8, 8], strides = [1, 1]} : vector<8x16xf32> to vector<8x8xf32>
    %cst_7 = arith.constant dense<0xFF800000> : vector<8xf32>
    %12 = vector.multi_reduction <maximumf>, %11, %cst_7 [1] : vector<8x8xf32> to vector<8xf32>
    %13 = vector.shape_cast %12 : vector<8xf32> to vector<8x1xf32>
    %14 = vector.broadcast %13 : vector<8x1xf32> to vector<8x8xf32>
    %15 = arith.subf %11, %14 : vector<8x8xf32>
    %16 = math.exp %15 : vector<8x8xf32>
    %cst_8 = arith.constant dense<0.000000e+00> : vector<8xf32>
    %17 = vector.multi_reduction <add>, %16, %cst_8 [1] : vector<8x8xf32> to vector<8xf32>
    %18 = vector.shape_cast %17 : vector<8xf32> to vector<8x1xf32>
    %19 = tpu.reciprocal %18 {approx = true} : vector<8x1xf32> -> vector<8x1xf32>
    %20 = vector.broadcast %19 : vector<8x1xf32> to vector<8x8xf32>
    %21 = arith.mulf %16, %20 : vector<8x8xf32>
    %22 = vector.extract_strided_slice %8 {offsets = [0, 8], sizes = [8, 8], strides = [1, 1]} : vector<8x16xf32> to vector<8x8xf32>
    %cst_9 = arith.constant dense<0xFF800000> : vector<8xf32>
    %23 = vector.multi_reduction <maximumf>, %22, %cst_9 [1] : vector<8x8xf32> to vector<8xf32>
    %24 = vector.shape_cast %23 : vector<8xf32> to vector<8x1xf32>
    %25 = vector.broadcast %24 : vector<8x1xf32> to vector<8x8xf32>
    %26 = arith.subf %22, %25 : vector<8x8xf32>
    %27 = math.exp %26 : vector<8x8xf32>
    %cst_10 = arith.constant dense<0.000000e+00> : vector<8xf32>
    %28 = vector.multi_reduction <add>, %27, %cst_10 [1] : vector<8x8xf32> to vector<8xf32>
    %29 = vector.shape_cast %28 : vector<8xf32> to vector<8x1xf32>
    %30 = tpu.reciprocal %29 {approx = true} : vector<8x1xf32> -> vector<8x1xf32>
    %31 = vector.broadcast %30 : vector<8x1xf32> to vector<8x8xf32>
    %32 = arith.mulf %27, %31 : vector<8x8xf32>
    %33 = tpu.concatenate %21, %32 in 1 : vector<8x8xf32>, vector<8x8xf32> -> vector<8x16xf32>
    %34 = arith.negf %10 : vector<8x16xf32>
    %35 = math.exp %34 : vector<8x16xf32>
    %cst_11 = arith.constant 1.000000e+00 : f32
    %36 = vector.broadcast %cst_11 : f32 to vector<8x16xf32>
    %37 = arith.addf %36, %35 : vector<8x16xf32>
    %38 = arith.divf %36, %37 : vector<8x16xf32>
    %cst_12 = arith.constant 2.000000e+00 : f32
    %39 = vector.broadcast %cst_12 : f32 to vector<8x16xf32>
    %40 = arith.mulf %39, %38 : vector<8x16xf32>
    %cst_13 = arith.constant 0.000000e+00 : f32
    %41 = vector.broadcast %cst_13 : f32 to vector<8x80xf32>
    %42 = tpu.concatenate %33, %9, %40, %41 in 1 : vector<8x16xf32>, vector<8x16xf32>, vector<8x16xf32>, vector<8x80xf32> -> vector<8x128xf32>
    %c0_14 = arith.constant 0 : index
    %c0_15 = arith.constant 0 : index
    %c0_16 = arith.constant 0 : index
    %43 = vector.load %arg4[%c0_14, %c0_15, %c0_16] : memref<1x8x128xf32, #tpu.memory_space<vmem>>, vector<1x8x128xf32>
    %44 = vector.shape_cast %43 : vector<1x8x128xf32> to vector<8x128xf32>
    %45 = vector.shape_cast %42 : vector<8x128xf32> to vector<1x8x128xf32>
    tpu.vector_store %arg4[%c0_14, %c0_15, %c0_16], %45 {strides = array<i32>} : memref<1x8x128xf32, #tpu.memory_space<vmem>>, vector<1x8x128xf32>,
    return
  }
  func.func @transform_0(%arg0: i32) -> (i32, i32) {
    %c0_i32 = arith.constant 0 : i32
    %c0_i32_0 = arith.constant 0 : i32
    %c0_i32_1 = arith.constant 0 : i32
    return %c0_i32, %c0_i32_0 : i32, i32
  }
  func.func @transform_1(%arg0: i32) -> (i32, i32, i32) {
    %c0_i32 = arith.constant 0 : i32
    %c0_i32_0 = arith.constant 0 : i32
    %c0_i32_1 = arith.constant 0 : i32
    return %arg0, %c0_i32, %c0_i32_0 : i32, i32, i32
  }
  func.func @transform_2(%arg0: i32) -> (i32, i32, i32) {
    %c0_i32 = arith.constant 0 : i32
    %c0_i32_0 = arith.constant 0 : i32
    %c0_i32_1 = arith.constant 0 : i32
    return %arg0, %c0_i32, %c0_i32_0 : i32, i32, i32
  }
  func.func @transform_3(%arg0: i32) -> (i32, i32, i32) {
    %c0_i32 = arith.constant 0 : i32
    %c0_i32_0 = arith.constant 0 : i32
    %c0_i32_1 = arith.constant 0 : i32
    return %arg0, %c0_i32, %c0_i32_0 : i32, i32, i32
  }
}

</mosaic_0001>

<bundles_post_ra>
// kernel: tpu_custom_call.1
= control target key start
LH: loop header
LB: loop body
LE: loop exit
PB: predicated region body
PF: predicated region fallthrough
CT: control target
= control target key end

     0   :  { %8 = vsyncpa [#allocation3], 0  ;;  %s932_s0 = inlined_call_operand.hbm [shape: f32[8,32], index: 0, kind: input, shape index: {}]   ;;  %s933_s1 = inlined_call_operand.hbm [shape: f32[2,32,128], index: 1, kind: input, shape index: {}]   ;;  %s934_s2 = inlined_call_operand.vmem [shape: f32[2,1,128], index: 2, kind: input, shape index: {}]   ;;  %s935_s3 = inlined_call_operand.hbm [shape: f32[2,8,128], index: 3, kind: output, shape index: {}]  }
   0x1   :  { %9 = vsyncpa [#allocation6], 0 }
   0x2   :  { %11 = vsyncpa [#allocation6 + $0x1], 0 }
   0x3   :  { %12 = vsyncpa [#allocation4], 0 }
   0x4   :  { %14 = vsyncpa [#allocation4 + $0x1], 0  ;;  %s724_s12 = smov 0   ;;  %s726_s13 = smov 0  }
   0x5   :  { %s728_s14 = smov 0   ;;  %s730_s15 = smov 0  }
   0x6 LB: > { %s745_s16 = sadd.s32 4294967295, %s693_s15   ;;  %s449_s17 = sadd.s32 4294967294, %s693_s15   ;;  %s693_s15 = sphi %s730_s15, %s960_s15   ;;  %s689_s14 = sphi %s728_s14, %s959_s14   ;;  %s685_s13 = sphi %s726_s13, %s958_s13   ;;  %s681_s12 = sphi %s724_s12, %s957_s12  }
   0x7   : > { %s749_s18 = sadd.s32 1, %s693_s15   ;;  %s48_s19 = sadd.s32 1, %s689_s14 }
   0x8   : > { %s45_s20 = ssub.s32 %s693_s15, %s749_s18  ;;  %p55_p0 = scmp.ne.s32.totalorder %s689_s14, %s685_s13 }
   0x9   : > { %p46_p1 = scmp.eq.s32.totalorder %s45_s20, 0  ;;  %p56_p2 = scmp.eq.s32.totalorder %s693_s15, 0 }
   0xa   : > { %p61_p3 = scmp.ne.s32.totalorder %s685_s13, %s681_s12  ;;  %p936_p4 = scmp.eq.s32.totalorder %s745_s16, 0 }
   0xb   : > { %s761_s21 = scalar_select %p46_p1, %s689_s14, %s48_s19  }
   0xc   : > { %p763_p5 = por %p56_p2, %p55_p0  ;;  %p769_p6 = por %p936_p4, %p61_p3 }
   0xd   : > { %p111_p7 = scmp.eq.s32.totalorder %s745_s16, 1  ;;  %p117_p8 = scmp.eq.s32.totalorder %s449_s17, 1 }
   0xe   : > { %s942_s23 = scalar_select %p769_p6, 1, 0 }
   0xf   : > { %p450_p9 = scmp.ge.s32.totalorder %s693_s15, 1  ;;  %p124_p10 = scmp.lt.s32.totalorder %s693_s15, 3 }
  0x10   : > { %p776_p11 = por %p111_p7, %p55_p0  ;;  %p780_p12 = por %p117_p8, %p61_p3 }
  0x11   : > { %p784_p13 = pnand %p450_p9, %p124_p10  ;;  %s695_s27 = smov [#allocation2]  }
  0x12   : > { %s943_s24 = scalar_select %p776_p11, 1, 0 }
  0x13   : > { %s944_s25 = scalar_select %p780_p12, 1, 0 }
  0x14   : > { %s945_s26 = scalar_select %p784_p13, 1, 0 }
  0x15   : > { %p498_p2 = pneg %p784_p13  ;;  %s137_s28 = sshll.u32 %s695_s27, 4  ;;  %s138_s28 = int_to_ptr.vmem [resolvable:$true] %s137_s28 }
  0x16   : > { %p511_p4 = scmp.lt.s32.totalorder %s693_s15, 2  ;;  %p946_p0 = scmp.eq.s32.totalorder %s745_s16, 0 }
  0x17   : > { %s148_s30 = sand.u32 1, %s689_s14   ;;  %s565_s8 = scalar_lea.hbm %s932_s0, 128 }
  0x18   : > { %p794_p7 = pnand %p498_p2, %p946_p0  ;;  %p801_p3 = pnand %p511_p4, %p763_p5 }
  0x19   : > { %s453_s5 = sshll.u32 %s148_s30, 5  ;;  %p566_p8 = scmp.ne.s32.totalorder %s932_s0, %s565_s8 }
  0x1a   : > { %s948_s4 = scalar_select %p801_p3, 1, 0 }
  0x1b   : > { %p567_p9 = pneg %p794_p7  ;;  %p572_p4 = scmp.lt.u32.totalorder %s565_s8, %s932_s0 }
  0x1d   : > { %p568_p10 = pnand %p567_p9, %p566_p8 }
  0x1f   : > { %p569_p2 = pneg %p568_p10 }
  0x21   : > { %p574_p5 = pnand %p572_p4, %p569_p2 }
  0x23   : > { %577 = shalt.err (!%p574_p5)
}
  0x24   : > { %s578_s19 = scalar_lea.vmem %s138_s28, 128  ;;  %p586_p11 = scmp.lt.s32.totalorder %s138_s28, %s138_s28 }
  0x25   : > { %p579_p0 = scmp.ne.s32.totalorder %s138_s28, %s578_s19  ;;  %p587_p6 = scmp.lt.s32.totalorder %s578_s19, %s578_s19 }
  0x27   : > { %p581_p1 = pnand %p579_p0, %p567_p9  ;;  %p588_p13 = por %p587_p6, %p586_p11 }
  0x29   : > { %p582_p12 = pneg %p581_p1 }
  0x2b   : > { %p589_p3 = pnand %p588_p13, %p582_p12 }
  0x2d   : > { %592 = shalt.err (!%p589_p3)
}
  0x2e   : > { %501 = dma.hbm_to_vmem [thread:$0]  (!%p794_p7), %s932_s0, 128, %s138_s28, [#allocation3]  }
  0x2f   : > { %s467_s27 = sshll.u32 %s693_s15, 9  ;;  %s152_s6 = scalar_lea.vmem [#allocation5], %s453_s5 }
  0x30   : > { %s159_s7 = sshll.u32 %s152_s6, 4  ;;  %s825_s10 = scalar_lea.hbm %s933_s1, %s467_s27  ;;  %s827_s7 = int_to_ptr.vmem [resolvable:$true] %s159_s7 }
  0x31   : > { %s829_s29 = scalar_lea.sflag [#allocation6], %s148_s30  ;;  %s593_s11 = scalar_lea.hbm %s825_s10, 512 }
  0x32   : > { %p594_p6 = scmp.ne.s32.totalorder %s825_s10, %s593_s11  ;;  %p949_p11 = scmp.ne.s32.totalorder %s948_s4, 0 }
  0x33   : > { %s598_s17 = scalar_lea.hbm %s933_s1, 1024  ;;  %p599_p7 = scmp.lt.u32.totalorder %s825_s10, %s933_s1 }
  0x34   : > { %p595_p12 = pneg %p949_p11  ;;  %p600_p3 = scmp.lt.u32.totalorder %s598_s17, %s593_s11 }
  0x35   : > { %p602_p9 = scmp.lt.u32.totalorder %s593_s11, %s825_s10 }
  0x36   : > { %p596_p13 = pnand %p595_p12, %p594_p6  ;;  %p601_p8 = por %p600_p3, %p599_p7 }
  0x38   : > { %p597_p1 = pneg %p596_p13  ;;  %p603_p10 = por %p602_p9, %p601_p8 }
  0x3a   : > { %p604_p2 = pnand %p603_p10, %p597_p1 }
  0x3c   : > { %607 = shalt.err (!%p604_p2)
}
  0x3d   : > { %s608_s30 = scalar_lea.vmem %s827_s7, 512  ;;  %s696_s22 = smov [#allocation5]  }
  0x3e   : > { %p609_p4 = scmp.ne.s32.totalorder %s827_s7, %s608_s30  ;;  %s613_s27 = sshll.u32 %s696_s22, 4  ;;  %s614_s27 = int_to_ptr.vmem [resolvable:$false] %s613_s27 }
  0x3f   : > { %s615_s6 = scalar_lea.vmem %s614_s27, 1024  ;;  %p616_p6 = scmp.lt.s32.totalorder %s827_s7, %s614_s27 }
  0x40   : > { %p611_p5 = pnand %p609_p4, %p595_p12  ;;  %p617_p13 = scmp.lt.s32.totalorder %s615_s6, %s608_s30 }
  0x42   : > { %p612_p0 = pneg %p611_p5  ;;  %p618_p7 = por %p617_p13, %p616_p6 }
  0x44   : > { %p619_p3 = pnand %p618_p7, %p612_p0 }
  0x46   : > { %622 = shalt.err (!%p619_p3)
}
  0x47   : > { %s697_s8 = smov 128   ;;  %s698_s9 = smov 8  }
  0x48   : > { %505 = dma.hbm_to_vmem [thread:$0]  (!%p949_p11), %s825_s10, 512, %s827_s7, %s829_s29, %s697_s8, %s697_s8, %s698_s9  }
  0x49   : > { %p950_p12 = scmp.ne.s32.totalorder %s945_s26, 0 }
  0x4a   : > { %p951_p1 = scmp.eq.s32.totalorder (!%p950_p12), %s745_s16, 0 }
  0x4b   : > { %177 = sbr.rel (%p950_p12) target bundleno = 758 (0x2f6), region = 32 }
  0x52   : > { %668 = dma.done.wait (%p951_p1), [#allocation3], 128   ;;  %p952_p8 = pmov %p951_p1 }
  0x53   : > { %s864_s11 = sand.u32 1, %s685_s13   ;;  %p953_p9 = scmp.ne.s32.totalorder %s942_s23, 0 }
  0x54   : > { %670 = vsyncadd (%p952_p8), [#allocation3], 4294967168  ;;  %s458_s28 = sshll.u32 %s864_s11, 5  ;;  %s184_s5 = scalar_lea.sflag [#allocation6], %s864_s11 }
  0x55   : > { %s187_s17 = scalar_lea.vmem [#allocation5], %s458_s28 }
  0x56   : > { %672 = dma.done.wait (%p953_p9), %s184_s5, 512  }
  0x57   : > { %674 = vsyncadd (%p953_p9), %s184_s5, 4294966784  ;;  %v699_v0 = vmov 0.0|0.0   ;;  %vm700_vm0 = vmmov 0   ;;  %v701_v1 = vmov 0.0   ;;  %v217_v2 = vld [vmem:[%s187_s17] sm:$0xff]  ;;  %v218_v3 = vld [vmem:[%s187_s17 + $0x8] sm:$0xff] }
  0x58   : > { %484 = vmatprep.subr.bf16.mxu0 %v699_v0  ;;  %481 = vmatprep.mubr.msk.f32.mxu0 %vm700_vm0, %v701_v1  ;;  %v219_v4 = vld [vmem:[%s187_s17 + $0x10] sm:$0xff]  ;;  %v485_v5 = vpack.c.bf16 %v218_v3, %v217_v2  ;;  %v220_v6 = vld [vmem:[%s187_s17 + $0x18] sm:$0xff]  ;;  %vm228_vm1 = vcmask 261120   ;;  %p213_p11 = scmp.lt.s32.totalorder %s745_s16, 1  ;;  %vm314_vm2 = vcmask 130112   ;;  %vm302_vm3 = vcmask 64512  }
  0x59   : > { %v488_v7 = vpack.c.bf16 %v220_v6, %v219_v4  ;;  %v216_v8 = vld [vmem:[#allocation2] sm:$0xff]  ;;  %s702_s10 = smov 120   ;;  %s459_s29 = sshll.u32 %s864_s11, 3  ;;  %vm338_vm4 = vcmask 130048   ;;  %vm341_vm5 = vcmask 392192  }
  0x5a   : > { %486 = vmatpush3.bf16.msra.mxu0 %v485_v5  ;;  %s214_s23 = scalar_select %p213_p11, %s745_s16, 1 }
  0x5b   : > { %487 = vmatprep.subr.bf16.mxu0 %v699_v0  ;;  %s464_s19 = sshll.u32 %s745_s16, 7  ;;  %s212_s20 = scalar_lea.vmem [#allocation7], %s459_s29 }
  0x5c   : > { %s215_s7 = scalar_lea.vmem %s934_s2, %s214_s23  ;;  %s358_s30 = sshll.u32 %s212_s20, 4  ;;  %s890_s30 = int_to_ptr.vmem [resolvable:$true] %s358_s30 }
  0x5d   : > { %v460_v9 = vld [vmem:[%s215_s7] ss:$0 sm:$0xff]  ;;  %s888_s6 = scalar_lea.hbm %s935_s3, %s464_s19  ;;  %s345_s16 = scalar_lea.sflag [#allocation4], %s864_s11 }
  0x5e   : > { %489 = vmatpush3.bf16.msra.mxu0 %v488_v7  ;;  %s623_s8 = scalar_lea.vmem %s890_s30, 128  ;;  %p954_p2 = scmp.ne.s32.totalorder %s943_s24, 0 }
  0x5f   : > { %p624_p10 = scmp.ne.s32.totalorder %s890_s30, %s623_s8  ;;  %s703_s9 = smov [#allocation7]  }
  0x60   : > { %s627_s28 = sshll.u32 %s703_s9, 4  ;;  %s628_s28 = int_to_ptr.vmem [resolvable:$false] %s627_s28 }
  0x61   : > { %482 = vmatmul.mubr.msk.f32.vlgmr.msra.gmra.mrb[0].mxu0 %vm228_vm1, %v216_v8  ;;  %p625_p4 = pnand %p624_p10, %p954_p2  ;;  %s629_s5 = scalar_lea.vmem %s628_s28, 256 }
  0x62   : > { %p630_p0 = scmp.lt.s32.totalorder %s890_s30, %s628_s28  ;;  %p631_p6 = scmp.lt.s32.totalorder %s629_s5, %s623_s8 }
  0x63   : > { %p626_p5 = pneg %p625_p4 }
  0x64   : > { %p632_p13 = por %p631_p6, %p630_p0 }
  0x66   : > { %p633_p7 = pnand %p632_p13, %p626_p5 }
 0x134   : > { %v298_v10 = vpop.f32.mrb[0].mxu0 }
 0x135   : > { %v299_v11 = vadd.f32 %v460_v9, %v298_v10  ;;  %v483_v12 = vpop.f32.mrb[1].mxu0 }
 0x137   : > { %v315_v13 = vsel %vm314_vm2, %v299_v11, -inf  ;;  %v303_v14 = vsel %vm302_vm3, %v299_v11, -inf  ;;  %v462_v26 = vmul.f32 -1.442695, %v299_v11 }
 0x138   : > { %316 = vmax.xlane.f32.xlu0 %v315_v13 }
 0x13c   : > { %304 = vmax.xlane.f32.xlu0 %v303_v14 }
 0x1c5   : > { %v317_v15 = vpop.xlane.xlu0 %316 }
 0x1c6   : > { %v318_v16 = vsub.f32 %v299_v11, %v317_v15 }
 0x1c8   : > { %v319_v17 = vmul.f32 1.442695, %v318_v16 }
 0x1c9   : > { %v305_v19 = vpop.xlane.xlu0 %304 }
 0x1ca   : > { %553 = vpow2.f32 %v319_v17  ;;  %v306_v20 = vsub.f32 %v299_v11, %v305_v19 }
 0x1cc   : > { %v307_v21 = vmul.f32 1.442695, %v306_v20 }
 0x1ce   : > { %555 = vpow2.f32 %v307_v21 }
 0x1cf   : > { %557 = vpow2.f32 %v462_v26 }
 0x1d4   : > { %v554_v18 = vpop.eup %553 }
 0x1d5   : > { %322 = vrot.lane.b32.xlu1 %v554_v18, %s702_s10 }
 0x1d8   : > { %v556_v22 = vpop.eup %555 }
 0x1d9   : > { %v309_v23 = vsel %vm302_vm3, %v556_v22, 0.0  ;;  %v558_v27 = vpop.eup %557 }
 0x1da   : > { %v334_v29 = vadd.f32 1.0, %v558_v27 }
 0x1f9   : > { %310 = vadd.xlane.f32.xlu1 %v309_v23 }
 0x247   : > { %v323_v24 = vpop.permute.xlu1 %322 }
 0x248   : > { %v325_v25 = vsel %vm302_vm3, %v323_v24, 0.0 }
 0x249   : > { %326 = vadd.xlane.f32.xlu0 %v325_v25 }
 0x286   : > { %v311_v28 = vpop.xlane.xlu1 %310 }
 0x287   : > { %559 = vrcp.f32 %v311_v28 }
 0x288   : > { %561 = vrcp.f32 %v334_v29 }
 0x291   : > { %v560_v31 = vpop.eup %559 }
 0x292   : > { %v562_v32 = vpop.eup %561  ;;  %v313_v34 = vmul.f32 %v560_v31, %v556_v22 }
 0x293   : > { %v337_v37 = vmul.f32 2.0, %v562_v32 }
 0x2d6   : > { %v327_v30 = vpop.xlane.xlu0 %326 }
 0x2d7   : > { %563 = vrcp.f32 %v327_v30 }
 0x2e1   : > { %v564_v33 = vpop.eup %563 }
 0x2e2   : > { %v329_v35 = vmul.f32 %v564_v33, %v554_v18 }
 0x2e4   : > { %v330_v36 = vsel %vm302_vm3, %v313_v34, %v329_v35 }
 0x2e5   : > { %v339_v38 = vsel %vm338_vm4, %v330_v36, %v299_v11 }
 0x2e6   : > { %v340_v39 = vsel %vm228_vm1, %v339_v38, %v337_v37 }
 0x2e7   : > { %v342_v40 = vsel %vm341_vm5, %v340_v39, 0.0 }
 0x2e8   : > { %343 = vst [vmem:[%s212_s20] sm:$0xff] %v342_v40 }
 0x2e9   : > { %636 = shalt.err (!%p633_p7)
}
 0x2ea   : > { %s637_s11 = scalar_lea.hbm %s888_s6, 128  ;;  %s641_s26 = scalar_lea.hbm %s935_s3, 256 }
 0x2eb   : > { %p638_p3 = scmp.ne.s32.totalorder %s888_s6, %s637_s11  ;;  %p642_p8 = scmp.lt.u32.totalorder %s888_s6, %s935_s3 }
 0x2ec   : > { %p643_p9 = scmp.lt.u32.totalorder %s641_s26, %s637_s11  ;;  %p645_p10 = scmp.lt.u32.totalorder %s637_s11, %s888_s6 }
 0x2ed   : > { %p639_p12 = pnand %p638_p3, %p954_p2 }
 0x2ee   : > { %p644_p11 = por %p643_p9, %p642_p8 }
 0x2ef   : > { %p640_p1 = pneg %p639_p12 }
 0x2f0   : > { %p646_p4 = por %p645_p10, %p644_p11 }
 0x2f2   : > { %p647_p5 = pnand %p646_p4, %p640_p1 }
 0x2f4   : > { %650 = shalt.err (!%p647_p5)
}
 0x2f5   : > { %496 = dma.vmem_to_hbm [thread:$0]  (%p954_p2), %s890_s30, 128, %s888_s6, %s345_s16  }
 0x2f6 PF: > { %s370_s10 = sand.u32 1, %s681_s12   ;;  %p955_p0 = scmp.ne.s32.totalorder %s944_s25, 0 }
 0x2f7   : > { %p956_p6 = scmp.ge.s32.totalorder %s693_s15, 2  ;;  %s371_s29 = scalar_lea.sflag [#allocation4], %s370_s10 }
 0x2f9   : > { %p507_p13 = pnand %p956_p6, %p955_p0 }
 0x2fb   : > { %676 = dma.done.wait (!%p507_p13), %s371_s29, 128  }
 0x2fc   : > { %678 = vsyncadd (!%p507_p13), %s371_s29, 4294967168  ;;  %p17_p7 = scmp.ge.s32.totalorder %s749_s18, 4   ;;  %s957_s12 = smov %s685_s13 }
 0x2fd   : > { %s958_s13 = smov %s689_s14  ;;  %s959_s14 = smov %s761_s21 }
 0x2fe   : > { %s960_s15 = smov %s749_s18  ;;  %19 = sbr.rel (!%p17_p7) target bundleno = 6 (0x6), region = 85 }
 0x305   :  { %376 = vsyncpa [#allocation3], 1 }
 0x306   :  { %378 = vsyncpa [#allocation3 + $0x1], 1 }
 0x307   :  { %379 = vsyncpa [#allocation6], 1 }
 0x308   :  { %381 = vsyncpa [#allocation6 + $0x1], 1 }
 0x309   :  { %382 = vsyncpa [#allocation4], 1 }
 0x30a   :  { %384 = vsyncpa [#allocation4 + $0x1], 1 }

</bundles_post_ra>
